<compile_context>
chip_gen: v6e
topology: v6e:2x2x1
jax: 0.10.0
libtpu: 0.0.40
codegen_flags: <defaults>
</compile_context>

<pallas_src>
import functools

import jax
import jax.numpy as jnp
from jax.experimental import pallas as pl
from jax.experimental.pallas import tpu as pltpu

_LANES = 128
_SUBLANES = 8
_SMALL_N_THRESHOLD = 32 * 1024        # below this, plain XLA is faster


def _cdiv(a, b):
    return -(-a // b)


def _chip_config():
    """(num_tensorcore_splits, target_block_bytes_per_input, vmem_limit_bytes)."""
    kind = ""
    try:
        kind = jax.devices()[0].device_kind.lower()
    except Exception:
        pass
    if "v7" in kind:
        # 2 TCs @ ~3.2 TB/s/TC: big blocks hide the ~0.35 us per-step overhead.
        # 2 inputs x 2 bufs x 4 MiB = 16 MiB << 40 MiB scoped (64 MiB physical).
        return 2, 4 << 20, 40 << 20
    if "v6" in kind:
        # Single TC, 32 MiB default scoped VMEM: 2 MiB blocks (8 MiB buffered).
        return 1, 2 << 20, None
    # v5e (16 MiB default scoped VMEM) / unknown: stay conservative.
    return 1, 1 << 20, None


def _sublane_packing(dtype):
    # f32 -> 8 sublanes per vreg, bf16 -> 16, int8/fp8 -> 32.
    itemsize = jnp.dtype(dtype).itemsize
    return _SUBLANES * max(1, 4 // itemsize)


def _mae_partial_kernel(y_ref, yp_ref, part_ref, *,
                        tile_rows, tiles_per_split, valid_rows, mask_possible):
    c = pl.program_id(0)          # TensorCore split (parallel)
    t = pl.program_id(1)          # streaming reduction step (arbitrary)

    @pl.when(t == 0)
    def _():
        part_ref[...] = jnp.zeros_like(part_ref)

    tile_idx = c * tiles_per_split + t
    groups = tile_rows // _SUBLANES

    def _accumulate(masked):
        d = jnp.abs(yp_ref[...].astype(jnp.float32)
                    - y_ref[...].astype(jnp.float32))
        if masked:
            # Rows past the end of the (padded) array: partial trailing block,
            # or a clamped duplicate block of an idle split.
            row_ids = jax.lax.broadcasted_iota(jnp.int32, (tile_rows, _LANES), 0)
            d = jnp.where(tile_idx * tile_rows + row_ids < valid_rows, d, 0.0)
        # Pure-VALU accumulation into one (8, 128) vreg-shaped partial; the
        # single cross-lane reduce + divide-by-N is a tiny plain-JAX epilogue.
        # TODO(synk): verify in the Mosaic bundle dump that this reshape+sum
        # fuses (no materialised (tile_rows,128) diff); restructure as a
        # fori_loop over (8,128) row groups if it does not.
        part_ref[...] += jnp.sum(
            d.reshape(groups, _SUBLANES, _LANES), axis=0)

    if mask_possible:
        needs_mask = (tile_idx + 1) * tile_rows > valid_rows

        @pl.when(jnp.logical_not(needs_mask))
        def _():
            _accumulate(False)          # hot path: no iota / compare / select

        @pl.when(needs_mask)
        def _():
            _accumulate(True)           # cold path: final / clamped tile only
    else:
        _accumulate(False)


def mae_loss(y, yp, *, _block_bytes=None, _splits=None):
    assert y.shape == yp.shape, (y.shape, yp.shape)
    out_dtype = jnp.result_type(y.dtype, yp.dtype)
    n_true = int(y.size)

    y = jnp.ravel(y)                    # free reshape; native dtype kept
    yp = jnp.ravel(yp)

    # Tiny inputs: fixed pallas_call overhead dominates -> plain XLA.
    if n_true <= _SMALL_N_THRESHOLD:
        return jnp.mean(jnp.abs(yp.astype(jnp.float32)
                                - y.astype(jnp.float32))).astype(out_dtype)

    splits, target_block_bytes, vmem_limit = _chip_config()
    if _block_bytes is not None:        # test / tuning override
        target_block_bytes = _block_bytes
    if _splits is not None:
        splits = _splits

    # dtype-aware packing: keeps the second-to-last block dim a multiple of the
    # native sublane tile (8 f32 / 16 bf16 / 32 int8).
    packing = max(_sublane_packing(y.dtype), _sublane_packing(yp.dtype))
    chunk = packing * _LANES

    # Pad (one materialised copy) only for ragged sizes; padded zeros add 0 to
    # the |y - yp| sum and the mean divides by the true N.
    rem = n_true % chunk
    if rem:
        y = jnp.pad(y, (0, chunk - rem))
        yp = jnp.pad(yp, (0, chunk - rem))

    rows = y.shape[0] // _LANES         # multiple of `packing`
    y2 = y.reshape(rows, _LANES)
    yp2 = yp.reshape(rows, _LANES)

    max_itemsize = max(jnp.dtype(y.dtype).itemsize, jnp.dtype(yp.dtype).itemsize)
    tile_rows = target_block_bytes // (_LANES * max_itemsize)
    tile_rows = max(packing, (tile_rows // packing) * packing)
    tile_rows = min(tile_rows, rows)

    tiles_total = _cdiv(rows, tile_rows)
    splits = max(1, min(splits, tiles_total))     # never schedule idle splits
    tiles_per_split = _cdiv(tiles_total, splits)
    # Only the trailing / clamped tile can ever need the in-kernel row mask.
    mask_possible = (splits * tiles_per_split * tile_rows != rows)

    def in_map(c, t):
        # Clamp so the DMA never starts past the array; the masked branch
        # zeroes any contribution from a clamped (duplicate) block.
        return (jnp.minimum(c * tiles_per_split + t, tiles_total - 1), 0)

    kernel = functools.partial(
        _mae_partial_kernel,
        tile_rows=tile_rows,
        tiles_per_split=tiles_per_split,
        valid_rows=rows,
        mask_possible=mask_possible,
    )

    partials = pl.pallas_call(
        kernel,
        out_shape=jax.ShapeDtypeStruct((splits * _SUBLANES, _LANES), jnp.float32),
        grid_spec=pltpu.PrefetchScalarGridSpec(
            num_scalar_prefetch=0,
            grid=(splits, tiles_per_split),
            in_specs=[
                pl.BlockSpec((tile_rows, _LANES), in_map),
                pl.BlockSpec((tile_rows, _LANES), in_map),
            ],
            out_specs=pl.BlockSpec((_SUBLANES, _LANES), lambda c, t: (c, 0)),
        ),
        # TODO(synk): on v7x, verify via xprof that the size-2 "parallel" axis
        # engages both TensorCores; switch to pltpu.CORE_PARALLEL if it does not.
        compiler_params=pltpu.CompilerParams(
            dimension_semantics=("parallel", "arbitrary"),
            vmem_limit_bytes=vmem_limit,
        ),
    )(y2, yp2)

    # Tiny O(1) epilogue: combine per-core partials and normalise by true N.
    return (jnp.sum(partials) / jnp.float32(n_true)).astype(out_dtype)


def _reference_loss(y, yp):
    # Plain-JAX reference mirroring the PyTorch module exactly.
    return jnp.mean(jnp.abs(yp.astype(jnp.float32) - y.astype(jnp.float32)))


if __name__ == "__main__":
    key = jax.random.PRNGKey(0)

    # (shape, mae_loss kwargs)
    cases = [
        ((2, 4, 16, 16), {}),                 # tiny: plain-XLA bypass path
        ((2, 4, 128, 128), {}),               # kernel path, unmasked hot loop
        ((3, 97, 131),                        # ragged numel, small block override:
         dict(_block_bytes=64 << 10,          # exercises 2-way split, clamped
              _splits=2)),                    # duplicate block, masked tail tile
    ]

    ok = True
    for idx, (shape, kwargs) in enumerate(cases):
        ky, kyp = jax.random.split(jax.random.fold_in(key, idx))
        y = jax.random.normal(ky, shape, dtype=jnp.float32)
        yp = jax.random.normal(kyp, shape, dtype=jnp.float32)

        loss = mae_loss(y, yp, **kwargs)
        jax.block_until_ready(loss)

        ref = _reference_loss(y, yp)
        if not jnp.allclose(loss, ref, rtol=1e-4, atol=1e-6):
            ok = False
            print("MISMATCH", shape, float(loss), float(ref))

    assert ok
    print("KERNEL_OK")
</pallas_src>

<mosaic_0001>
module attributes {stable_mosaic.version = 11 : i64} {
  func.func @_mae_partial_kernel(%arg0: i32, %arg1: i32, %arg2: memref<1024x128xf32, #tpu.memory_space<vmem>>, %arg3: memref<1024x128xf32, #tpu.memory_space<vmem>>, %arg4: memref<8x128xf32, #tpu.memory_space<vmem>>) attributes {dimension_semantics = [#tpu.dimension_semantics<parallel>, #tpu.dimension_semantics<arbitrary>], iteration_bounds = array<i64: 1, 1>, scalar_prefetch = 0 : i64, scratch_operands = 0 : i64, tpu.core_type = #tpu.core_type<tc>, window_params = [{transform_indices = @transform_0, window_bounds = array<i64: 1024, 128>}, {transform_indices = @transform_1, window_bounds = array<i64: 1024, 128>}, {transform_indices = @transform_2, window_bounds = array<i64: 8, 128>}]} {
    %c0_i32 = arith.constant 0 : i32
    %0 = arith.cmpi eq, %arg1, %c0_i32 : i32
    %1 = arith.extui %0 : i1 to i32
    %c0_i32_0 = arith.constant 0 : i32
    %2 = arith.cmpi ne, %1, %c0_i32_0 : i32
    scf.if %2 {
      %cst_8 = arith.constant 0.000000e+00 : f32
      %12 = vector.broadcast %cst_8 : f32 to vector<8x128xf32>
      %c0_9 = arith.constant 0 : index
      %c0_10 = arith.constant 0 : index
      %13 = vector.load %arg4[%c0_9, %c0_10] : memref<8x128xf32, #tpu.memory_space<vmem>>, vector<8x128xf32>
      tpu.vector_store %arg4[%c0_9, %c0_10], %12 {strides = array<i32>} : memref<8x128xf32, #tpu.memory_space<vmem>>, vector<8x128xf32>,
    } else {
    }
    %c0 = arith.constant 0 : index
    %c0_1 = arith.constant 0 : index
    %3 = vector.load %arg3[%c0, %c0_1] : memref<1024x128xf32, #tpu.memory_space<vmem>>, vector<1024x128xf32>
    %c0_2 = arith.constant 0 : index
    %c0_3 = arith.constant 0 : index
    %4 = vector.load %arg2[%c0_2, %c0_3] : memref<1024x128xf32, #tpu.memory_space<vmem>>, vector<1024x128xf32>
    %5 = arith.subf %3, %4 : vector<1024x128xf32>
    %6 = math.absf %5 : vector<1024x128xf32>
    %c0_4 = arith.constant 0 : index
    %c0_5 = arith.constant 0 : index
    %7 = vector.load %arg4[%c0_4, %c0_5] : memref<8x128xf32, #tpu.memory_space<vmem>>, vector<8x128xf32>
    %8 = vector.shape_cast %6 : vector<1024x128xf32> to vector<128x8x128xf32>
    %cst = arith.constant dense<0.000000e+00> : vector<8x128xf32>
    %9 = vector.multi_reduction <add>, %8, %cst [0] : vector<128x8x128xf32> to vector<8x128xf32>
    %10 = arith.addf %7, %9 : vector<8x128xf32>
    %c0_6 = arith.constant 0 : index
    %c0_7 = arith.constant 0 : index
    %11 = vector.load %arg4[%c0_6, %c0_7] : memref<8x128xf32, #tpu.memory_space<vmem>>, vector<8x128xf32>
    tpu.vector_store %arg4[%c0_6, %c0_7], %10 {strides = array<i32>} : memref<8x128xf32, #tpu.memory_space<vmem>>, vector<8x128xf32>,
    return
  }
  func.func @transform_0(%arg0: i32, %arg1: i32) -> (i32, i32) {
    %c1_i32 = arith.constant 1 : i32
    %0 = arith.muli %arg0, %c1_i32 : i32
    %1 = arith.addi %0, %arg1 : i32
    %c0_i32 = arith.constant 0 : i32
    %2 = arith.minsi %1, %c0_i32 : i32
    %c0_i32_0 = arith.constant 0 : i32
    %c0_i32_1 = arith.constant 0 : i32
    return %2, %c0_i32_0 : i32, i32
  }
  func.func @transform_1(%arg0: i32, %arg1: i32) -> (i32, i32) {
    %c1_i32 = arith.constant 1 : i32
    %0 = arith.muli %arg0, %c1_i32 : i32
    %1 = arith.addi %0, %arg1 : i32
    %c0_i32 = arith.constant 0 : i32
    %2 = arith.minsi %1, %c0_i32 : i32
    %c0_i32_0 = arith.constant 0 : i32
    %c0_i32_1 = arith.constant 0 : i32
    return %2, %c0_i32_0 : i32, i32
  }
  func.func @transform_2(%arg0: i32, %arg1: i32) -> (i32, i32) {
    %c0_i32 = arith.constant 0 : i32
    %c0_i32_0 = arith.constant 0 : i32
    return %arg0, %c0_i32 : i32, i32
  }
}

</mosaic_0001>

<bundles_post_ra>
// kernel: tpu_custom_call.1
= control target key start
LH: loop header
LB: loop body
LE: loop exit
PB: predicated region body
PF: predicated region fallthrough
CT: control target
= control target key end

     0   :  { %7 = vsyncpa [#allocation3], 0  ;;  %s828_s0 = inlined_call_operand.hbm [shape: f32[1024,128], index: 0, kind: input, shape index: {}]   ;;  %s829_s1 = inlined_call_operand.hbm [shape: f32[1024,128], index: 1, kind: input, shape index: {}]   ;;  %s830_s2 = inlined_call_operand.hbm [shape: f32[8,128], index: 2, kind: output, shape index: {}]  }
   0x1   :  { %8 = vsyncpa [#allocation6], 0 }
   0x2   :  { %9 = vsyncpa [#allocation4], 0  ;;  %s799_s9 = smov [#allocation2]  }
   0x3   :  { %s21_s10 = sshll.u32 %s799_s9, 4  ;;  %s22_s10 = int_to_ptr.vmem [resolvable:$true] %s21_s10 }
   0x4   :  { %s741_s11 = scalar_lea.vmem %s22_s10, 16384  ;;  %p746_p1 = scmp.lt.s32.totalorder %s22_s10, %s22_s10 }
   0x5   :  { %p742_p0 = scmp.ne.s32.totalorder %s22_s10, %s741_s11  ;;  %p747_p2 = scmp.lt.s32.totalorder %s741_s11, %s741_s11 }
   0x7   :  { %p748_p3 = por %p747_p2, %p746_p1 }
   0x9   :  { %p749_p4 = pnand %p748_p3, %p742_p0 }
   0xb   :  { %752 = shalt.err (!%p749_p4)
}
   0xc   :  { %s800_s12 = smov 128   ;;  %s801_s13 = smov 8  }
   0xd   :  { %27 = dma.hbm_to_vmem [thread:$0]  %s828_s0, 16384, %s22_s10, [#allocation3], %s800_s12, %s800_s12, %s801_s13  }
   0xe   :  { %s802_s16 = smov [#allocation5]  }
   0xf   :  { %s39_s17 = sshll.u32 %s802_s16, 4  ;;  %s40_s17 = int_to_ptr.vmem [resolvable:$true] %s39_s17 }
  0x10   :  { %s761_s18 = scalar_lea.vmem %s40_s17, 16384  ;;  %p766_p6 = scmp.lt.s32.totalorder %s40_s17, %s40_s17 }
  0x11   :  { %p762_p5 = scmp.ne.s32.totalorder %s40_s17, %s761_s18  ;;  %p767_p7 = scmp.lt.s32.totalorder %s761_s18, %s761_s18 }
  0x13   :  { %p768_p8 = por %p767_p7, %p766_p6 }
  0x15   :  { %p769_p9 = pnand %p768_p8, %p762_p5 }
  0x17   :  { %772 = shalt.err (!%p769_p9)
}
  0x18   :  { %45 = dma.hbm_to_vmem [thread:$0]  %s829_s1, 16384, %s40_s17, [#allocation6], %s800_s12, %s800_s12, %s801_s13  }
  0x19   :  { %793 = dma.done.wait [#allocation3], 16384  }
  0x1a   :  { %794 = vsyncadd [#allocation3], 4294950912 }
  0x1b   :  { %795 = dma.done.wait [#allocation6], 16384  }
  0x1c   :  { %796 = vsyncadd [#allocation6], 4294950912  ;;  %v65_v0 = vld [vmem:[#allocation5] sm:$0xff]  ;;  %v66_v1 = vld [vmem:[#allocation5 + $0x8] sm:$0xff]  ;;  %s803_s0 = smov [#allocation7]  }
  0x1d   :  { %v193_v2 = vld [vmem:[#allocation2] sm:$0xff]  ;;  %v194_v3 = vld [vmem:[#allocation2 + $0x8] sm:$0xff]  ;;  %v67_v4 = vld [vmem:[#allocation5 + $0x10] sm:$0xff]  ;;  %s713_s1 = sshll.u32 %s803_s0, 4  ;;  %s714_s1 = int_to_ptr.vmem [resolvable:$true] %s713_s1 }
  0x1e   :  { %v195_v5 = vld [vmem:[#allocation2 + $0x10] sm:$0xff]  ;;  %v321_v6 = vsub.f32 %v65_v0, %v193_v2  ;;  %v322_v7 = vsub.f32 %v66_v1, %v194_v3  ;;  %v68_v8 = vld [vmem:[#allocation5 + $0x18] sm:$0xff]  ;;  %v69_v11 = vld [vmem:[#allocation5 + $0x20] sm:$0xff]  ;;  %s773_s21 = scalar_lea.vmem %s714_s1, 128  ;;  %p778_p11 = scmp.lt.s32.totalorder %s714_s1, %s714_s1 }
  0x1f   :  { %v196_v9 = vld [vmem:[#allocation2 + $0x18] sm:$0xff]  ;;  %v323_v10 = vsub.f32 %v67_v4, %v195_v5  ;;  %v197_v12 = vld [vmem:[#allocation2 + $0x20] sm:$0xff]  ;;  %v70_v16 = vld [vmem:[#allocation5 + $0x28] sm:$0xff]  ;;  %p774_p10 = scmp.ne.s32.totalorder %s714_s1, %s773_s21  ;;  %p779_p12 = scmp.lt.s32.totalorder %s773_s21, %s773_s21 }
  0x20   :  { %v324_v13 = vsub.f32 %v68_v8, %v196_v9  ;;  %v449_v14 = vand.u32 2147483647, %v321_v6  ;;  %v450_v15 = vand.u32 2147483647, %v322_v7  ;;  %v198_v17 = vld [vmem:[#allocation2 + $0x28] sm:$0xff]  ;;  %v325_v18 = vsub.f32 %v69_v11, %v197_v12  ;;  %v71_v20 = vld [vmem:[#allocation5 + $0x30] sm:$0xff] }
  0x21   :  { %v451_v19 = vand.u32 2147483647, %v323_v10  ;;  %v199_v21 = vld [vmem:[#allocation2 + $0x30] sm:$0xff]  ;;  %v326_v22 = vsub.f32 %v70_v16, %v198_v17  ;;  %v72_v25 = vld [vmem:[#allocation5 + $0x38] sm:$0xff]  ;;  %v73_v30 = vld [vmem:[#allocation5 + $0x40] sm:$0xff]  ;;  %p780_p13 = por %p779_p12, %p778_p11 }
  0x22   :  { %v452_v23 = vand.u32 2147483647, %v324_v13  ;;  %v578_v24 = vadd.f32 %v450_v15, %v449_v14  ;;  %v200_v26 = vld [vmem:[#allocation2 + $0x38] sm:$0xff]  ;;  %v327_v27 = vsub.f32 %v71_v20, %v199_v21  ;;  %v453_v28 = vand.u32 2147483647, %v325_v18  ;;  %v201_v31 = vld [vmem:[#allocation2 + $0x40] sm:$0xff] }
  0x23   :  { %v328_v32 = vsub.f32 %v72_v25, %v200_v26  ;;  %v454_v33 = vand.u32 2147483647, %v326_v22  ;;  %v74_v35 = vld [vmem:[#allocation5 + $0x48] sm:$0xff]  ;;  %v329_v37 = vsub.f32 %v73_v30, %v201_v31  ;;  %v75_v40 = vld [vmem:[#allocation5 + $0x50] sm:$0xff]  ;;  %v76_v45 = vld [vmem:[#allocation5 + $0x58] sm:$0xff]  ;;  %p781_p0 = pnand %p780_p13, %p774_p10 }
  0x24   :  { %v579_v29 = vadd.f32 %v578_v24, %v451_v19  ;;  %v202_v36 = vld [vmem:[#allocation2 + $0x48] sm:$0xff]  ;;  %v455_v38 = vand.u32 2147483647, %v327_v27  ;;  %v203_v41 = vld [vmem:[#allocation2 + $0x50] sm:$0xff]  ;;  %v204_v46 = vld [vmem:[#allocation2 + $0x58] sm:$0xff] }
  0x25   :  { %v330_v42 = vsub.f32 %v74_v35, %v202_v36  ;;  %v456_v43 = vand.u32 2147483647, %v328_v32  ;;  %v331_v47 = vsub.f32 %v75_v40, %v203_v41  ;;  %v457_v48 = vand.u32 2147483647, %v329_v37  ;;  %v77_v50 = vld [vmem:[#allocation5 + $0x60] sm:$0xff]  ;;  %v78_v55 = vld [vmem:[#allocation5 + $0x68] sm:$0xff] }
  0x26   :  { %v580_v34 = vadd.f32 %v579_v29, %v452_v23  ;;  %v205_v51 = vld [vmem:[#allocation2 + $0x60] sm:$0xff]  ;;  %v332_v52 = vsub.f32 %v76_v45, %v204_v46  ;;  %v206_v56 = vld [vmem:[#allocation2 + $0x68] sm:$0xff]  ;;  %v79_v60 = vld [vmem:[#allocation5 + $0x70] sm:$0xff] }
  0x27   :  { %v458_v53 = vand.u32 2147483647, %v330_v42  ;;  %v333_v57 = vsub.f32 %v77_v50, %v205_v51  ;;  %v459_v58 = vand.u32 2147483647, %v331_v47  ;;  %v207_v61 = vld [vmem:[#allocation2 + $0x70] sm:$0xff]  ;;  %v334_v62 = vsub.f32 %v78_v55, %v206_v56  ;;  %v80_v1 = vld [vmem:[#allocation5 + $0x78] sm:$0xff] }
  0x28   :  { %v581_v39 = vadd.f32 %v580_v34, %v453_v28  ;;  %v460_v63 = vand.u32 2147483647, %v332_v52  ;;  %v208_v2 = vld [vmem:[#allocation2 + $0x78] sm:$0xff]  ;;  %v335_v3 = vsub.f32 %v79_v60, %v207_v61  ;;  %v81_v6 = vld [vmem:[#allocation5 + $0x80] sm:$0xff]  ;;  %v82_v11 = vld [vmem:[#allocation5 + $0x88] sm:$0xff] }
  0x29   :  { %v461_v4 = vand.u32 2147483647, %v333_v57  ;;  %v209_v7 = vld [vmem:[#allocation2 + $0x80] sm:$0xff]  ;;  %v336_v8 = vsub.f32 %v80_v1, %v208_v2  ;;  %v462_v9 = vand.u32 2147483647, %v334_v62  ;;  %v210_v12 = vld [vmem:[#allocation2 + $0x88] sm:$0xff] }
  0x2a   :  { %v582_v44 = vadd.f32 %v581_v39, %v454_v33  ;;  %v337_v13 = vsub.f32 %v81_v6, %v209_v7  ;;  %v463_v14 = vand.u32 2147483647, %v335_v3  ;;  %v83_v16 = vld [vmem:[#allocation5 + $0x90] sm:$0xff]  ;;  %v338_v18 = vsub.f32 %v82_v11, %v210_v12  ;;  %v84_v21 = vld [vmem:[#allocation5 + $0x98] sm:$0xff]  ;;  %v85_v26 = vld [vmem:[#allocation5 + $0xa0] sm:$0xff] }
  0x2b   :  { %v211_v17 = vld [vmem:[#allocation2 + $0x90] sm:$0xff]  ;;  %v464_v19 = vand.u32 2147483647, %v336_v8  ;;  %v212_v22 = vld [vmem:[#allocation2 + $0x98] sm:$0xff]  ;;  %v213_v27 = vld [vmem:[#allocation2 + $0xa0] sm:$0xff] }
  0x2c   :  { %v583_v49 = vadd.f32 %v582_v44, %v455_v38  ;;  %v339_v23 = vsub.f32 %v83_v16, %v211_v17  ;;  %v465_v24 = vand.u32 2147483647, %v337_v13  ;;  %v340_v28 = vsub.f32 %v84_v21, %v212_v22  ;;  %v86_v31 = vld [vmem:[#allocation5 + $0xa8] sm:$0xff]  ;;  %v87_v36 = vld [vmem:[#allocation5 + $0xb0] sm:$0xff]  ;;  %v88_v41 = vld [vmem:[#allocation5 + $0xb8] sm:$0xff] }
  0x2d   :  { %v466_v29 = vand.u32 2147483647, %v338_v18  ;;  %v214_v32 = vld [vmem:[#allocation2 + $0xa8] sm:$0xff]  ;;  %v341_v33 = vsub.f32 %v85_v26, %v213_v27  ;;  %v215_v37 = vld [vmem:[#allocation2 + $0xb0] sm:$0xff]  ;;  %v216_v42 = vld [vmem:[#allocation2 + $0xb8] sm:$0xff] }
  0x2e   :  { %v584_v54 = vadd.f32 %v583_v49, %v456_v43  ;;  %v467_v34 = vand.u32 2147483647, %v339_v23  ;;  %v342_v38 = vsub.f32 %v86_v31, %v214_v32  ;;  %v468_v39 = vand.u32 2147483647, %v340_v28  ;;  %v89_v46 = vld [vmem:[#allocation5 + $0xc0] sm:$0xff]  ;;  %v90_v51 = vld [vmem:[#allocation5 + $0xc8] sm:$0xff] }
  0x2f   :  { %v343_v43 = vsub.f32 %v87_v36, %v215_v37  ;;  %v469_v44 = vand.u32 2147483647, %v341_v33  ;;  %v217_v47 = vld [vmem:[#allocation2 + $0xc0] sm:$0xff]  ;;  %v218_v52 = vld [vmem:[#allocation2 + $0xc8] sm:$0xff]  ;;  %v91_v56 = vld [vmem:[#allocation5 + $0xd0] sm:$0xff] }
  0x30   :  { %v585_v59 = vadd.f32 %v584_v54, %v457_v48  ;;  %v344_v48 = vsub.f32 %v88_v41, %v216_v42  ;;  %v470_v49 = vand.u32 2147483647, %v342_v38  ;;  %v219_v57 = vld [vmem:[#allocation2 + $0xd0] sm:$0xff]  ;;  %v92_v61 = vld [vmem:[#allocation5 + $0xd8] sm:$0xff]  ;;  %v93_v2 = vld [vmem:[#allocation5 + $0xe0] sm:$0xff] }
  0x31   :  { %v471_v54 = vand.u32 2147483647, %v343_v43  ;;  %v220_v62 = vld [vmem:[#allocation2 + $0xd8] sm:$0xff]  ;;  %v221_v3 = vld [vmem:[#allocation2 + $0xe0] sm:$0xff]  ;;  %v94_v7 = vld [vmem:[#allocation5 + $0xe8] sm:$0xff] }
  0x32   :  { %v586_v0 = vadd.f32 %v585_v59, %v458_v53  ;;  %v345_v53 = vsub.f32 %v89_v46, %v217_v47  ;;  %v472_v59 = vand.u32 2147483647, %v344_v48  ;;  %v222_v8 = vld [vmem:[#allocation2 + $0xe8] sm:$0xff]  ;;  %v95_v12 = vld [vmem:[#allocation5 + $0xf0] sm:$0xff]  ;;  %v96_v17 = vld [vmem:[#allocation5 + $0xf8] sm:$0xff] }
  0x33   :  { %v223_v13 = vld [vmem:[#allocation2 + $0xf0] sm:$0xff]  ;;  %v224_v18 = vld [vmem:[#allocation2 + $0xf8] sm:$0xff]  ;;  %v97_v22 = vld [vmem:[#allocation5 + $0x100] sm:$0xff] }
  0x34   :  { %v587_v5 = vadd.f32 %v586_v0, %v459_v58  ;;  %v346_v58 = vsub.f32 %v90_v51, %v218_v52  ;;  %v473_v0 = vand.u32 2147483647, %v345_v53  ;;  %v225_v23 = vld [vmem:[#allocation2 + $0x100] sm:$0xff]  ;;  %v98_v27 = vld [vmem:[#allocation5 + $0x108] sm:$0xff]  ;;  %v99_v32 = vld [vmem:[#allocation5 + $0x110] sm:$0xff] }
  0x35   :  { %v226_v28 = vld [vmem:[#allocation2 + $0x108] sm:$0xff]  ;;  %v227_v33 = vld [vmem:[#allocation2 + $0x110] sm:$0xff]  ;;  %v100_v37 = vld [vmem:[#allocation5 + $0x118] sm:$0xff] }
  0x36   :  { %v588_v10 = vadd.f32 %v587_v5, %v460_v63  ;;  %v347_v63 = vsub.f32 %v91_v56, %v219_v57  ;;  %v474_v5 = vand.u32 2147483647, %v346_v58  ;;  %v228_v38 = vld [vmem:[#allocation2 + $0x118] sm:$0xff]  ;;  %v101_v42 = vld [vmem:[#allocation5 + $0x120] sm:$0xff]  ;;  %v102_v47 = vld [vmem:[#allocation5 + $0x128] sm:$0xff] }
  0x37   :  { %v229_v43 = vld [vmem:[#allocation2 + $0x120] sm:$0xff]  ;;  %v230_v48 = vld [vmem:[#allocation2 + $0x128] sm:$0xff]  ;;  %v103_v52 = vld [vmem:[#allocation5 + $0x130] sm:$0xff] }
  0x38   :  { %v589_v15 = vadd.f32 %v588_v10, %v461_v4  ;;  %v348_v4 = vsub.f32 %v92_v61, %v220_v62  ;;  %v475_v10 = vand.u32 2147483647, %v347_v63  ;;  %v231_v53 = vld [vmem:[#allocation2 + $0x130] sm:$0xff]  ;;  %v104_v57 = vld [vmem:[#allocation5 + $0x138] sm:$0xff]  ;;  %v105_v62 = vld [vmem:[#allocation5 + $0x140] sm:$0xff] }
  0x39   :  { %v232_v58 = vld [vmem:[#allocation2 + $0x138] sm:$0xff]  ;;  %v233_v63 = vld [vmem:[#allocation2 + $0x140] sm:$0xff] }
  0x3a   :  { %v590_v20 = vadd.f32 %v589_v15, %v462_v9  ;;  %v349_v9 = vsub.f32 %v93_v2, %v221_v3  ;;  %v476_v15 = vand.u32 2147483647, %v348_v4  ;;  %v106_v3 = vld [vmem:[#allocation5 + $0x148] sm:$0xff] }
  0x3b   :  { %v234_v4 = vld [vmem:[#allocation2 + $0x148] sm:$0xff] }
  0x3c   :  { %v591_v25 = vadd.f32 %v590_v20, %v463_v14  ;;  %v350_v14 = vsub.f32 %v94_v7, %v222_v8  ;;  %v477_v20 = vand.u32 2147483647, %v349_v9  ;;  %v107_v8 = vld [vmem:[#allocation5 + $0x150] sm:$0xff] }
  0x3d   :  { %v235_v9 = vld [vmem:[#allocation2 + $0x150] sm:$0xff] }
  0x3e   :  { %v592_v30 = vadd.f32 %v591_v25, %v464_v19  ;;  %v351_v19 = vsub.f32 %v95_v12, %v223_v13  ;;  %v478_v25 = vand.u32 2147483647, %v350_v14  ;;  %v108_v13 = vld [vmem:[#allocation5 + $0x158] sm:$0xff] }
  0x3f   :  { %v236_v14 = vld [vmem:[#allocation2 + $0x158] sm:$0xff] }
  0x40   :  { %v593_v35 = vadd.f32 %v592_v30, %v465_v24  ;;  %v352_v24 = vsub.f32 %v96_v17, %v224_v18  ;;  %v479_v30 = vand.u32 2147483647, %v351_v19  ;;  %v109_v18 = vld [vmem:[#allocation5 + $0x160] sm:$0xff] }
  0x41   :  { %v237_v19 = vld [vmem:[#allocation2 + $0x160] sm:$0xff] }
  0x42   :  { %v594_v40 = vadd.f32 %v593_v35, %v466_v29  ;;  %v353_v29 = vsub.f32 %v97_v22, %v225_v23  ;;  %v480_v35 = vand.u32 2147483647, %v352_v24  ;;  %v110_v23 = vld [vmem:[#allocation5 + $0x168] sm:$0xff] }
  0x43   :  { %v238_v24 = vld [vmem:[#allocation2 + $0x168] sm:$0xff] }
  0x44   :  { %v595_v45 = vadd.f32 %v594_v40, %v467_v34  ;;  %v354_v34 = vsub.f32 %v98_v27, %v226_v28  ;;  %v481_v40 = vand.u32 2147483647, %v353_v29  ;;  %v111_v28 = vld [vmem:[#allocation5 + $0x170] sm:$0xff] }
  0x45   :  { %v239_v29 = vld [vmem:[#allocation2 + $0x170] sm:$0xff] }
  0x46   :  { %v596_v50 = vadd.f32 %v595_v45, %v468_v39  ;;  %v355_v39 = vsub.f32 %v99_v32, %v227_v33  ;;  %v482_v45 = vand.u32 2147483647, %v354_v34  ;;  %v112_v33 = vld [vmem:[#allocation5 + $0x178] sm:$0xff] }
  0x47   :  { %v240_v34 = vld [vmem:[#allocation2 + $0x178] sm:$0xff] }
  0x48   :  { %v597_v55 = vadd.f32 %v596_v50, %v469_v44  ;;  %v356_v44 = vsub.f32 %v100_v37, %v228_v38  ;;  %v483_v50 = vand.u32 2147483647, %v355_v39  ;;  %v113_v38 = vld [vmem:[#allocation5 + $0x180] sm:$0xff] }
  0x49   :  { %v241_v39 = vld [vmem:[#allocation2 + $0x180] sm:$0xff] }
  0x4a   :  { %v598_v60 = vadd.f32 %v597_v55, %v470_v49  ;;  %v357_v49 = vsub.f32 %v101_v42, %v229_v43  ;;  %v484_v55 = vand.u32 2147483647, %v356_v44  ;;  %v114_v43 = vld [vmem:[#allocation5 + $0x188] sm:$0xff] }
  0x4b   :  { %v242_v44 = vld [vmem:[#allocation2 + $0x188] sm:$0xff] }
  0x4c   :  { %v599_v1 = vadd.f32 %v598_v60, %v471_v54  ;;  %v358_v54 = vsub.f32 %v102_v47, %v230_v48  ;;  %v485_v60 = vand.u32 2147483647, %v357_v49  ;;  %v115_v48 = vld [vmem:[#allocation5 + $0x190] sm:$0xff] }
  0x4d   :  { %v243_v49 = vld [vmem:[#allocation2 + $0x190] sm:$0xff] }
  0x4e   :  { %v600_v6 = vadd.f32 %v599_v1, %v472_v59  ;;  %v359_v59 = vsub.f32 %v103_v52, %v231_v53  ;;  %v486_v1 = vand.u32 2147483647, %v358_v54  ;;  %v116_v53 = vld [vmem:[#allocation5 + $0x198] sm:$0xff] }
  0x4f   :  { %v244_v54 = vld [vmem:[#allocation2 + $0x198] sm:$0xff] }
  0x50   :  { %v601_v11 = vadd.f32 %v600_v6, %v473_v0  ;;  %v360_v0 = vsub.f32 %v104_v57, %v232_v58  ;;  %v487_v6 = vand.u32 2147483647, %v359_v59  ;;  %v117_v58 = vld [vmem:[#allocation5 + $0x1a0] sm:$0xff] }
  0x51   :  { %v245_v59 = vld [vmem:[#allocation2 + $0x1a0] sm:$0xff] }
  0x52   :  { %v602_v16 = vadd.f32 %v601_v11, %v474_v5  ;;  %v361_v5 = vsub.f32 %v105_v62, %v233_v63  ;;  %v488_v11 = vand.u32 2147483647, %v360_v0  ;;  %v118_v63 = vld [vmem:[#allocation5 + $0x1a8] sm:$0xff] }
  0x53   :  { %v246_v0 = vld [vmem:[#allocation2 + $0x1a8] sm:$0xff] }
  0x54   :  { %v603_v21 = vadd.f32 %v602_v16, %v475_v10  ;;  %v362_v10 = vsub.f32 %v106_v3, %v234_v4  ;;  %v489_v16 = vand.u32 2147483647, %v361_v5  ;;  %v119_v4 = vld [vmem:[#allocation5 + $0x1b0] sm:$0xff] }
  0x55   :  { %v247_v5 = vld [vmem:[#allocation2 + $0x1b0] sm:$0xff] }
  0x56   :  { %v604_v26 = vadd.f32 %v603_v21, %v476_v15  ;;  %v363_v15 = vsub.f32 %v107_v8, %v235_v9  ;;  %v490_v21 = vand.u32 2147483647, %v362_v10  ;;  %v120_v9 = vld [vmem:[#allocation5 + $0x1b8] sm:$0xff] }
  0x57   :  { %v248_v10 = vld [vmem:[#allocation2 + $0x1b8] sm:$0xff] }
  0x58   :  { %v605_v31 = vadd.f32 %v604_v26, %v477_v20  ;;  %v364_v20 = vsub.f32 %v108_v13, %v236_v14  ;;  %v491_v26 = vand.u32 2147483647, %v363_v15  ;;  %v121_v14 = vld [vmem:[#allocation5 + $0x1c0] sm:$0xff] }
  0x59   :  { %v249_v15 = vld [vmem:[#allocation2 + $0x1c0] sm:$0xff] }
  0x5a   :  { %v606_v36 = vadd.f32 %v605_v31, %v478_v25  ;;  %v365_v25 = vsub.f32 %v109_v18, %v237_v19  ;;  %v492_v31 = vand.u32 2147483647, %v364_v20  ;;  %v122_v19 = vld [vmem:[#allocation5 + $0x1c8] sm:$0xff] }
  0x5b   :  { %v250_v20 = vld [vmem:[#allocation2 + $0x1c8] sm:$0xff] }
  0x5c   :  { %v607_v41 = vadd.f32 %v606_v36, %v479_v30  ;;  %v366_v30 = vsub.f32 %v110_v23, %v238_v24  ;;  %v493_v36 = vand.u32 2147483647, %v365_v25  ;;  %v123_v24 = vld [vmem:[#allocation5 + $0x1d0] sm:$0xff] }
  0x5d   :  { %v251_v25 = vld [vmem:[#allocation2 + $0x1d0] sm:$0xff] }
  0x5e   :  { %v608_v46 = vadd.f32 %v607_v41, %v480_v35  ;;  %v367_v35 = vsub.f32 %v111_v28, %v239_v29  ;;  %v494_v41 = vand.u32 2147483647, %v366_v30  ;;  %v124_v29 = vld [vmem:[#allocation5 + $0x1d8] sm:$0xff] }
  0x5f   :  { %v252_v30 = vld [vmem:[#allocation2 + $0x1d8] sm:$0xff] }
  0x60   :  { %v609_v51 = vadd.f32 %v608_v46, %v481_v40  ;;  %v368_v40 = vsub.f32 %v112_v33, %v240_v34  ;;  %v495_v46 = vand.u32 2147483647, %v367_v35  ;;  %v125_v34 = vld [vmem:[#allocation5 + $0x1e0] sm:$0xff] }
  0x61   :  { %v253_v35 = vld [vmem:[#allocation2 + $0x1e0] sm:$0xff] }
  0x62   :  { %v610_v56 = vadd.f32 %v609_v51, %v482_v45  ;;  %v369_v45 = vsub.f32 %v113_v38, %v241_v39  ;;  %v496_v51 = vand.u32 2147483647, %v368_v40  ;;  %v126_v39 = vld [vmem:[#allocation5 + $0x1e8] sm:$0xff] }
  0x63   :  { %v254_v40 = vld [vmem:[#allocation2 + $0x1e8] sm:$0xff] }
  0x64   :  { %v611_v61 = vadd.f32 %v610_v56, %v483_v50  ;;  %v370_v50 = vsub.f32 %v114_v43, %v242_v44  ;;  %v497_v56 = vand.u32 2147483647, %v369_v45  ;;  %v127_v44 = vld [vmem:[#allocation5 + $0x1f0] sm:$0xff] }
  0x65   :  { %v255_v45 = vld [vmem:[#allocation2 + $0x1f0] sm:$0xff] }
  0x66   :  { %v612_v2 = vadd.f32 %v611_v61, %v484_v55  ;;  %v371_v55 = vsub.f32 %v115_v48, %v243_v49  ;;  %v498_v61 = vand.u32 2147483647, %v370_v50  ;;  %v128_v49 = vld [vmem:[#allocation5 + $0x1f8] sm:$0xff] }
  0x67   :  { %v256_v50 = vld [vmem:[#allocation2 + $0x1f8] sm:$0xff] }
  0x68   :  { %v613_v7 = vadd.f32 %v612_v2, %v485_v60  ;;  %v372_v60 = vsub.f32 %v116_v53, %v244_v54  ;;  %v499_v2 = vand.u32 2147483647, %v371_v55  ;;  %v129_v54 = vld [vmem:[#allocation5 + $0x200] sm:$0xff] }
  0x69   :  { %v257_v55 = vld [vmem:[#allocation2 + $0x200] sm:$0xff] }
  0x6a   :  { %v614_v12 = vadd.f32 %v613_v7, %v486_v1  ;;  %v373_v1 = vsub.f32 %v117_v58, %v245_v59  ;;  %v500_v7 = vand.u32 2147483647, %v372_v60  ;;  %v130_v59 = vld [vmem:[#allocation5 + $0x208] sm:$0xff] }
  0x6b   :  { %v258_v60 = vld [vmem:[#allocation2 + $0x208] sm:$0xff] }
  0x6c   :  { %v615_v17 = vadd.f32 %v614_v12, %v487_v6  ;;  %v374_v6 = vsub.f32 %v118_v63, %v246_v0  ;;  %v501_v12 = vand.u32 2147483647, %v373_v1  ;;  %v131_v0 = vld [vmem:[#allocation5 + $0x210] sm:$0xff] }
  0x6d   :  { %v259_v1 = vld [vmem:[#allocation2 + $0x210] sm:$0xff] }
  0x6e   :  { %v616_v22 = vadd.f32 %v615_v17, %v488_v11  ;;  %v375_v11 = vsub.f32 %v119_v4, %v247_v5  ;;  %v502_v17 = vand.u32 2147483647, %v374_v6  ;;  %v132_v5 = vld [vmem:[#allocation5 + $0x218] sm:$0xff] }
  0x6f   :  { %v260_v6 = vld [vmem:[#allocation2 + $0x218] sm:$0xff] }
  0x70   :  { %v617_v27 = vadd.f32 %v616_v22, %v489_v16  ;;  %v376_v16 = vsub.f32 %v120_v9, %v248_v10  ;;  %v503_v22 = vand.u32 2147483647, %v375_v11  ;;  %v133_v10 = vld [vmem:[#allocation5 + $0x220] sm:$0xff] }
  0x71   :  { %v261_v11 = vld [vmem:[#allocation2 + $0x220] sm:$0xff] }
  0x72   :  { %v618_v32 = vadd.f32 %v617_v27, %v490_v21  ;;  %v377_v21 = vsub.f32 %v121_v14, %v249_v15  ;;  %v504_v27 = vand.u32 2147483647, %v376_v16  ;;  %v134_v15 = vld [vmem:[#allocation5 + $0x228] sm:$0xff] }
  0x73   :  { %v262_v16 = vld [vmem:[#allocation2 + $0x228] sm:$0xff] }
  0x74   :  { %v619_v37 = vadd.f32 %v618_v32, %v491_v26  ;;  %v378_v26 = vsub.f32 %v122_v19, %v250_v20  ;;  %v505_v32 = vand.u32 2147483647, %v377_v21  ;;  %v135_v20 = vld [vmem:[#allocation5 + $0x230] sm:$0xff] }
  0x75   :  { %v263_v21 = vld [vmem:[#allocation2 + $0x230] sm:$0xff] }
  0x76   :  { %v620_v42 = vadd.f32 %v619_v37, %v492_v31  ;;  %v379_v31 = vsub.f32 %v123_v24, %v251_v25  ;;  %v506_v37 = vand.u32 2147483647, %v378_v26  ;;  %v136_v25 = vld [vmem:[#allocation5 + $0x238] sm:$0xff] }
  0x77   :  { %v264_v26 = vld [vmem:[#allocation2 + $0x238] sm:$0xff] }
  0x78   :  { %v621_v47 = vadd.f32 %v620_v42, %v493_v36  ;;  %v380_v36 = vsub.f32 %v124_v29, %v252_v30  ;;  %v507_v42 = vand.u32 2147483647, %v379_v31  ;;  %v137_v30 = vld [vmem:[#allocation5 + $0x240] sm:$0xff] }
  0x79   :  { %v265_v31 = vld [vmem:[#allocation2 + $0x240] sm:$0xff] }
  0x7a   :  { %v622_v52 = vadd.f32 %v621_v47, %v494_v41  ;;  %v381_v41 = vsub.f32 %v125_v34, %v253_v35  ;;  %v508_v47 = vand.u32 2147483647, %v380_v36  ;;  %v138_v35 = vld [vmem:[#allocation5 + $0x248] sm:$0xff] }
  0x7b   :  { %v266_v36 = vld [vmem:[#allocation2 + $0x248] sm:$0xff] }
  0x7c   :  { %v623_v57 = vadd.f32 %v622_v52, %v495_v46  ;;  %v382_v46 = vsub.f32 %v126_v39, %v254_v40  ;;  %v509_v52 = vand.u32 2147483647, %v381_v41  ;;  %v139_v40 = vld [vmem:[#allocation5 + $0x250] sm:$0xff] }
  0x7d   :  { %v267_v41 = vld [vmem:[#allocation2 + $0x250] sm:$0xff] }
  0x7e   :  { %v624_v62 = vadd.f32 %v623_v57, %v496_v51  ;;  %v383_v51 = vsub.f32 %v127_v44, %v255_v45  ;;  %v510_v57 = vand.u32 2147483647, %v382_v46  ;;  %v140_v45 = vld [vmem:[#allocation5 + $0x258] sm:$0xff] }
  0x7f   :  { %v268_v46 = vld [vmem:[#allocation2 + $0x258] sm:$0xff] }
  0x80   :  { %v625_v3 = vadd.f32 %v624_v62, %v497_v56  ;;  %v384_v56 = vsub.f32 %v128_v49, %v256_v50  ;;  %v511_v62 = vand.u32 2147483647, %v383_v51  ;;  %v141_v50 = vld [vmem:[#allocation5 + $0x260] sm:$0xff] }
  0x81   :  { %v269_v51 = vld [vmem:[#allocation2 + $0x260] sm:$0xff] }
  0x82   :  { %v626_v8 = vadd.f32 %v625_v3, %v498_v61  ;;  %v385_v61 = vsub.f32 %v129_v54, %v257_v55  ;;  %v512_v3 = vand.u32 2147483647, %v384_v56  ;;  %v142_v55 = vld [vmem:[#allocation5 + $0x268] sm:$0xff] }
  0x83   :  { %v270_v56 = vld [vmem:[#allocation2 + $0x268] sm:$0xff] }
  0x84   :  { %v627_v13 = vadd.f32 %v626_v8, %v499_v2  ;;  %v386_v2 = vsub.f32 %v130_v59, %v258_v60  ;;  %v513_v8 = vand.u32 2147483647, %v385_v61  ;;  %v143_v60 = vld [vmem:[#allocation5 + $0x270] sm:$0xff] }
  0x85   :  { %v271_v61 = vld [vmem:[#allocation2 + $0x270] sm:$0xff] }
  0x86   :  { %v628_v18 = vadd.f32 %v627_v13, %v500_v7  ;;  %v387_v7 = vsub.f32 %v131_v0, %v259_v1  ;;  %v514_v13 = vand.u32 2147483647, %v386_v2  ;;  %v144_v1 = vld [vmem:[#allocation5 + $0x278] sm:$0xff] }
  0x87   :  { %v272_v2 = vld [vmem:[#allocation2 + $0x278] sm:$0xff] }
  0x88   :  { %v629_v23 = vadd.f32 %v628_v18, %v501_v12  ;;  %v388_v12 = vsub.f32 %v132_v5, %v260_v6  ;;  %v515_v18 = vand.u32 2147483647, %v387_v7  ;;  %v145_v6 = vld [vmem:[#allocation5 + $0x280] sm:$0xff] }
  0x89   :  { %v273_v7 = vld [vmem:[#allocation2 + $0x280] sm:$0xff] }
  0x8a   :  { %v630_v28 = vadd.f32 %v629_v23, %v502_v17  ;;  %v389_v17 = vsub.f32 %v133_v10, %v261_v11  ;;  %v516_v23 = vand.u32 2147483647, %v388_v12  ;;  %v146_v11 = vld [vmem:[#allocation5 + $0x288] sm:$0xff] }
  0x8b   :  { %v274_v12 = vld [vmem:[#allocation2 + $0x288] sm:$0xff] }
  0x8c   :  { %v631_v33 = vadd.f32 %v630_v28, %v503_v22  ;;  %v390_v22 = vsub.f32 %v134_v15, %v262_v16  ;;  %v517_v28 = vand.u32 2147483647, %v389_v17  ;;  %v147_v16 = vld [vmem:[#allocation5 + $0x290] sm:$0xff] }
  0x8d   :  { %v275_v17 = vld [vmem:[#allocation2 + $0x290] sm:$0xff] }
  0x8e   :  { %v632_v38 = vadd.f32 %v631_v33, %v504_v27  ;;  %v391_v27 = vsub.f32 %v135_v20, %v263_v21  ;;  %v518_v33 = vand.u32 2147483647, %v390_v22  ;;  %v148_v21 = vld [vmem:[#allocation5 + $0x298] sm:$0xff] }
  0x8f   :  { %v276_v22 = vld [vmem:[#allocation2 + $0x298] sm:$0xff] }
  0x90   :  { %v633_v43 = vadd.f32 %v632_v38, %v505_v32  ;;  %v392_v32 = vsub.f32 %v136_v25, %v264_v26  ;;  %v519_v38 = vand.u32 2147483647, %v391_v27  ;;  %v149_v26 = vld [vmem:[#allocation5 + $0x2a0] sm:$0xff] }
  0x91   :  { %v277_v27 = vld [vmem:[#allocation2 + $0x2a0] sm:$0xff] }
  0x92   :  { %v634_v48 = vadd.f32 %v633_v43, %v506_v37  ;;  %v393_v37 = vsub.f32 %v137_v30, %v265_v31  ;;  %v520_v43 = vand.u32 2147483647, %v392_v32  ;;  %v150_v31 = vld [vmem:[#allocation5 + $0x2a8] sm:$0xff] }
  0x93   :  { %v278_v32 = vld [vmem:[#allocation2 + $0x2a8] sm:$0xff] }
  0x94   :  { %v635_v53 = vadd.f32 %v634_v48, %v507_v42  ;;  %v394_v42 = vsub.f32 %v138_v35, %v266_v36  ;;  %v521_v48 = vand.u32 2147483647, %v393_v37  ;;  %v151_v36 = vld [vmem:[#allocation5 + $0x2b0] sm:$0xff] }
  0x95   :  { %v279_v37 = vld [vmem:[#allocation2 + $0x2b0] sm:$0xff] }
  0x96   :  { %v636_v58 = vadd.f32 %v635_v53, %v508_v47  ;;  %v395_v47 = vsub.f32 %v139_v40, %v267_v41  ;;  %v522_v53 = vand.u32 2147483647, %v394_v42  ;;  %v152_v41 = vld [vmem:[#allocation5 + $0x2b8] sm:$0xff] }
  0x97   :  { %v280_v42 = vld [vmem:[#allocation2 + $0x2b8] sm:$0xff] }
  0x98   :  { %v637_v63 = vadd.f32 %v636_v58, %v509_v52  ;;  %v396_v52 = vsub.f32 %v140_v45, %v268_v46  ;;  %v523_v58 = vand.u32 2147483647, %v395_v47  ;;  %v153_v46 = vld [vmem:[#allocation5 + $0x2c0] sm:$0xff] }
  0x99   :  { %v281_v47 = vld [vmem:[#allocation2 + $0x2c0] sm:$0xff] }
  0x9a   :  { %v638_v4 = vadd.f32 %v637_v63, %v510_v57  ;;  %v397_v57 = vsub.f32 %v141_v50, %v269_v51  ;;  %v524_v63 = vand.u32 2147483647, %v396_v52  ;;  %v154_v51 = vld [vmem:[#allocation5 + $0x2c8] sm:$0xff] }
  0x9b   :  { %v282_v52 = vld [vmem:[#allocation2 + $0x2c8] sm:$0xff] }
  0x9c   :  { %v639_v9 = vadd.f32 %v638_v4, %v511_v62  ;;  %v398_v62 = vsub.f32 %v142_v55, %v270_v56  ;;  %v525_v4 = vand.u32 2147483647, %v397_v57  ;;  %v155_v56 = vld [vmem:[#allocation5 + $0x2d0] sm:$0xff] }
  0x9d   :  { %v283_v57 = vld [vmem:[#allocation2 + $0x2d0] sm:$0xff] }
  0x9e   :  { %v640_v14 = vadd.f32 %v639_v9, %v512_v3  ;;  %v399_v3 = vsub.f32 %v143_v60, %v271_v61  ;;  %v526_v9 = vand.u32 2147483647, %v398_v62  ;;  %v156_v61 = vld [vmem:[#allocation5 + $0x2d8] sm:$0xff] }
  0x9f   :  { %v284_v62 = vld [vmem:[#allocation2 + $0x2d8] sm:$0xff] }
  0xa0   :  { %v641_v19 = vadd.f32 %v640_v14, %v513_v8  ;;  %v400_v8 = vsub.f32 %v144_v1, %v272_v2  ;;  %v527_v14 = vand.u32 2147483647, %v399_v3  ;;  %v157_v2 = vld [vmem:[#allocation5 + $0x2e0] sm:$0xff] }
  0xa1   :  { %v285_v3 = vld [vmem:[#allocation2 + $0x2e0] sm:$0xff] }
  0xa2   :  { %v642_v24 = vadd.f32 %v641_v19, %v514_v13  ;;  %v401_v13 = vsub.f32 %v145_v6, %v273_v7  ;;  %v528_v19 = vand.u32 2147483647, %v400_v8  ;;  %v158_v7 = vld [vmem:[#allocation5 + $0x2e8] sm:$0xff] }
  0xa3   :  { %v286_v8 = vld [vmem:[#allocation2 + $0x2e8] sm:$0xff] }
  0xa4   :  { %v643_v29 = vadd.f32 %v642_v24, %v515_v18  ;;  %v402_v18 = vsub.f32 %v146_v11, %v274_v12  ;;  %v529_v24 = vand.u32 2147483647, %v401_v13  ;;  %v159_v12 = vld [vmem:[#allocation5 + $0x2f0] sm:$0xff] }
  0xa5   :  { %v287_v13 = vld [vmem:[#allocation2 + $0x2f0] sm:$0xff] }
  0xa6   :  { %v644_v34 = vadd.f32 %v643_v29, %v516_v23  ;;  %v403_v23 = vsub.f32 %v147_v16, %v275_v17  ;;  %v530_v29 = vand.u32 2147483647, %v402_v18  ;;  %v160_v17 = vld [vmem:[#allocation5 + $0x2f8] sm:$0xff] }
  0xa7   :  { %v288_v18 = vld [vmem:[#allocation2 + $0x2f8] sm:$0xff] }
  0xa8   :  { %v645_v39 = vadd.f32 %v644_v34, %v517_v28  ;;  %v404_v28 = vsub.f32 %v148_v21, %v276_v22  ;;  %v531_v34 = vand.u32 2147483647, %v403_v23  ;;  %v161_v22 = vld [vmem:[#allocation5 + $0x300] sm:$0xff] }
  0xa9   :  { %v289_v23 = vld [vmem:[#allocation2 + $0x300] sm:$0xff] }
  0xaa   :  { %v646_v44 = vadd.f32 %v645_v39, %v518_v33  ;;  %v405_v33 = vsub.f32 %v149_v26, %v277_v27  ;;  %v532_v39 = vand.u32 2147483647, %v404_v28  ;;  %v162_v27 = vld [vmem:[#allocation5 + $0x308] sm:$0xff] }
  0xab   :  { %v290_v28 = vld [vmem:[#allocation2 + $0x308] sm:$0xff] }
  0xac   :  { %v647_v49 = vadd.f32 %v646_v44, %v519_v38  ;;  %v406_v38 = vsub.f32 %v150_v31, %v278_v32  ;;  %v533_v44 = vand.u32 2147483647, %v405_v33  ;;  %v163_v32 = vld [vmem:[#allocation5 + $0x310] sm:$0xff] }
  0xad   :  { %v291_v33 = vld [vmem:[#allocation2 + $0x310] sm:$0xff] }
  0xae   :  { %v648_v54 = vadd.f32 %v647_v49, %v520_v43  ;;  %v407_v43 = vsub.f32 %v151_v36, %v279_v37  ;;  %v534_v49 = vand.u32 2147483647, %v406_v38  ;;  %v164_v37 = vld [vmem:[#allocation5 + $0x318] sm:$0xff] }
  0xaf   :  { %v292_v38 = vld [vmem:[#allocation2 + $0x318] sm:$0xff] }
  0xb0   :  { %v649_v59 = vadd.f32 %v648_v54, %v521_v48  ;;  %v408_v48 = vsub.f32 %v152_v41, %v280_v42  ;;  %v535_v54 = vand.u32 2147483647, %v407_v43  ;;  %v165_v42 = vld [vmem:[#allocation5 + $0x320] sm:$0xff] }
  0xb1   :  { %v293_v43 = vld [vmem:[#allocation2 + $0x320] sm:$0xff] }
  0xb2   :  { %v650_v0 = vadd.f32 %v649_v59, %v522_v53  ;;  %v409_v53 = vsub.f32 %v153_v46, %v281_v47  ;;  %v536_v59 = vand.u32 2147483647, %v408_v48  ;;  %v166_v47 = vld [vmem:[#allocation5 + $0x328] sm:$0xff] }
  0xb3   :  { %v294_v48 = vld [vmem:[#allocation2 + $0x328] sm:$0xff] }
  0xb4   :  { %v651_v5 = vadd.f32 %v650_v0, %v523_v58  ;;  %v410_v58 = vsub.f32 %v154_v51, %v282_v52  ;;  %v537_v0 = vand.u32 2147483647, %v409_v53  ;;  %v167_v52 = vld [vmem:[#allocation5 + $0x330] sm:$0xff] }
  0xb5   :  { %v295_v53 = vld [vmem:[#allocation2 + $0x330] sm:$0xff] }
  0xb6   :  { %v652_v10 = vadd.f32 %v651_v5, %v524_v63  ;;  %v411_v63 = vsub.f32 %v155_v56, %v283_v57  ;;  %v538_v5 = vand.u32 2147483647, %v410_v58  ;;  %v168_v57 = vld [vmem:[#allocation5 + $0x338] sm:$0xff] }
  0xb7   :  { %v296_v58 = vld [vmem:[#allocation2 + $0x338] sm:$0xff] }
  0xb8   :  { %v653_v15 = vadd.f32 %v652_v10, %v525_v4  ;;  %v412_v4 = vsub.f32 %v156_v61, %v284_v62  ;;  %v539_v10 = vand.u32 2147483647, %v411_v63  ;;  %v169_v62 = vld [vmem:[#allocation5 + $0x340] sm:$0xff] }
  0xb9   :  { %v297_v63 = vld [vmem:[#allocation2 + $0x340] sm:$0xff] }
  0xba   :  { %v654_v20 = vadd.f32 %v653_v15, %v526_v9  ;;  %v413_v9 = vsub.f32 %v157_v2, %v285_v3  ;;  %v540_v15 = vand.u32 2147483647, %v412_v4  ;;  %v170_v3 = vld [vmem:[#allocation5 + $0x348] sm:$0xff] }
  0xbb   :  { %v298_v4 = vld [vmem:[#allocation2 + $0x348] sm:$0xff] }
  0xbc   :  { %v655_v25 = vadd.f32 %v654_v20, %v527_v14  ;;  %v414_v14 = vsub.f32 %v158_v7, %v286_v8  ;;  %v541_v20 = vand.u32 2147483647, %v413_v9  ;;  %v171_v8 = vld [vmem:[#allocation5 + $0x350] sm:$0xff] }
  0xbd   :  { %v299_v9 = vld [vmem:[#allocation2 + $0x350] sm:$0xff] }
  0xbe   :  { %v656_v30 = vadd.f32 %v655_v25, %v528_v19  ;;  %v415_v19 = vsub.f32 %v159_v12, %v287_v13  ;;  %v542_v25 = vand.u32 2147483647, %v414_v14  ;;  %v172_v13 = vld [vmem:[#allocation5 + $0x358] sm:$0xff] }
  0xbf   :  { %v300_v14 = vld [vmem:[#allocation2 + $0x358] sm:$0xff] }
  0xc0   :  { %v657_v35 = vadd.f32 %v656_v30, %v529_v24  ;;  %v416_v24 = vsub.f32 %v160_v17, %v288_v18  ;;  %v543_v30 = vand.u32 2147483647, %v415_v19  ;;  %v173_v18 = vld [vmem:[#allocation5 + $0x360] sm:$0xff] }
  0xc1   :  { %v301_v19 = vld [vmem:[#allocation2 + $0x360] sm:$0xff] }
  0xc2   :  { %v658_v40 = vadd.f32 %v657_v35, %v530_v29  ;;  %v417_v29 = vsub.f32 %v161_v22, %v289_v23  ;;  %v544_v35 = vand.u32 2147483647, %v416_v24  ;;  %v174_v23 = vld [vmem:[#allocation5 + $0x368] sm:$0xff] }
  0xc3   :  { %v302_v24 = vld [vmem:[#allocation2 + $0x368] sm:$0xff] }
  0xc4   :  { %v659_v45 = vadd.f32 %v658_v40, %v531_v34  ;;  %v418_v34 = vsub.f32 %v162_v27, %v290_v28  ;;  %v545_v40 = vand.u32 2147483647, %v417_v29  ;;  %v175_v28 = vld [vmem:[#allocation5 + $0x370] sm:$0xff] }
  0xc5   :  { %v303_v29 = vld [vmem:[#allocation2 + $0x370] sm:$0xff] }
  0xc6   :  { %v660_v50 = vadd.f32 %v659_v45, %v532_v39  ;;  %v419_v39 = vsub.f32 %v163_v32, %v291_v33  ;;  %v546_v45 = vand.u32 2147483647, %v418_v34  ;;  %v176_v33 = vld [vmem:[#allocation5 + $0x378] sm:$0xff] }
  0xc7   :  { %v304_v34 = vld [vmem:[#allocation2 + $0x378] sm:$0xff] }
  0xc8   :  { %v661_v55 = vadd.f32 %v660_v50, %v533_v44  ;;  %v420_v44 = vsub.f32 %v164_v37, %v292_v38  ;;  %v547_v50 = vand.u32 2147483647, %v419_v39  ;;  %v177_v38 = vld [vmem:[#allocation5 + $0x380] sm:$0xff] }
  0xc9   :  { %v305_v39 = vld [vmem:[#allocation2 + $0x380] sm:$0xff] }
  0xca   :  { %v662_v60 = vadd.f32 %v661_v55, %v534_v49  ;;  %v421_v49 = vsub.f32 %v165_v42, %v293_v43  ;;  %v548_v55 = vand.u32 2147483647, %v420_v44  ;;  %v178_v43 = vld [vmem:[#allocation5 + $0x388] sm:$0xff] }
  0xcb   :  { %v306_v44 = vld [vmem:[#allocation2 + $0x388] sm:$0xff] }
  0xcc   :  { %v663_v1 = vadd.f32 %v662_v60, %v535_v54  ;;  %v422_v54 = vsub.f32 %v166_v47, %v294_v48  ;;  %v549_v60 = vand.u32 2147483647, %v421_v49  ;;  %v179_v48 = vld [vmem:[#allocation5 + $0x390] sm:$0xff] }
  0xcd   :  { %v307_v49 = vld [vmem:[#allocation2 + $0x390] sm:$0xff] }
  0xce   :  { %v664_v6 = vadd.f32 %v663_v1, %v536_v59  ;;  %v423_v59 = vsub.f32 %v167_v52, %v295_v53  ;;  %v550_v1 = vand.u32 2147483647, %v422_v54  ;;  %v180_v53 = vld [vmem:[#allocation5 + $0x398] sm:$0xff] }
  0xcf   :  { %v308_v54 = vld [vmem:[#allocation2 + $0x398] sm:$0xff] }
  0xd0   :  { %v665_v11 = vadd.f32 %v664_v6, %v537_v0  ;;  %v424_v0 = vsub.f32 %v168_v57, %v296_v58  ;;  %v551_v6 = vand.u32 2147483647, %v423_v59  ;;  %v181_v58 = vld [vmem:[#allocation5 + $0x3a0] sm:$0xff] }
  0xd1   :  { %v309_v59 = vld [vmem:[#allocation2 + $0x3a0] sm:$0xff] }
  0xd2   :  { %v666_v16 = vadd.f32 %v665_v11, %v538_v5  ;;  %v425_v5 = vsub.f32 %v169_v62, %v297_v63  ;;  %v552_v11 = vand.u32 2147483647, %v424_v0  ;;  %v182_v63 = vld [vmem:[#allocation5 + $0x3a8] sm:$0xff] }
  0xd3   :  { %v310_v0 = vld [vmem:[#allocation2 + $0x3a8] sm:$0xff] }
  0xd4   :  { %v667_v21 = vadd.f32 %v666_v16, %v539_v10  ;;  %v426_v10 = vsub.f32 %v170_v3, %v298_v4  ;;  %v553_v16 = vand.u32 2147483647, %v425_v5  ;;  %v183_v4 = vld [vmem:[#allocation5 + $0x3b0] sm:$0xff] }
  0xd5   :  { %v311_v5 = vld [vmem:[#allocation2 + $0x3b0] sm:$0xff] }
  0xd6   :  { %v668_v26 = vadd.f32 %v667_v21, %v540_v15  ;;  %v427_v15 = vsub.f32 %v171_v8, %v299_v9  ;;  %v554_v21 = vand.u32 2147483647, %v426_v10  ;;  %v184_v9 = vld [vmem:[#allocation5 + $0x3b8] sm:$0xff] }
  0xd7   :  { %v312_v10 = vld [vmem:[#allocation2 + $0x3b8] sm:$0xff] }
  0xd8   :  { %v669_v31 = vadd.f32 %v668_v26, %v541_v20  ;;  %v428_v20 = vsub.f32 %v172_v13, %v300_v14  ;;  %v555_v26 = vand.u32 2147483647, %v427_v15  ;;  %v185_v14 = vld [vmem:[#allocation5 + $0x3c0] sm:$0xff] }
  0xd9   :  { %v313_v15 = vld [vmem:[#allocation2 + $0x3c0] sm:$0xff] }
  0xda   :  { %v670_v36 = vadd.f32 %v669_v31, %v542_v25  ;;  %v429_v25 = vsub.f32 %v173_v18, %v301_v19  ;;  %v556_v31 = vand.u32 2147483647, %v428_v20  ;;  %v186_v19 = vld [vmem:[#allocation5 + $0x3c8] sm:$0xff] }
  0xdb   :  { %v314_v20 = vld [vmem:[#allocation2 + $0x3c8] sm:$0xff] }
  0xdc   :  { %v671_v41 = vadd.f32 %v670_v36, %v543_v30  ;;  %v430_v30 = vsub.f32 %v174_v23, %v302_v24  ;;  %v557_v36 = vand.u32 2147483647, %v429_v25  ;;  %v187_v24 = vld [vmem:[#allocation5 + $0x3d0] sm:$0xff] }
  0xdd   :  { %v315_v25 = vld [vmem:[#allocation2 + $0x3d0] sm:$0xff] }
  0xde   :  { %v672_v46 = vadd.f32 %v671_v41, %v544_v35  ;;  %v431_v35 = vsub.f32 %v175_v28, %v303_v29  ;;  %v558_v41 = vand.u32 2147483647, %v430_v30  ;;  %v188_v29 = vld [vmem:[#allocation5 + $0x3d8] sm:$0xff] }
  0xdf   :  { %v316_v30 = vld [vmem:[#allocation2 + $0x3d8] sm:$0xff] }
  0xe0   :  { %v673_v51 = vadd.f32 %v672_v46, %v545_v40  ;;  %v432_v40 = vsub.f32 %v176_v33, %v304_v34  ;;  %v559_v46 = vand.u32 2147483647, %v431_v35  ;;  %v189_v34 = vld [vmem:[#allocation5 + $0x3e0] sm:$0xff] }
  0xe1   :  { %v317_v35 = vld [vmem:[#allocation2 + $0x3e0] sm:$0xff] }
  0xe2   :  { %v674_v56 = vadd.f32 %v673_v51, %v546_v45  ;;  %v433_v45 = vsub.f32 %v177_v38, %v305_v39  ;;  %v560_v51 = vand.u32 2147483647, %v432_v40  ;;  %v190_v39 = vld [vmem:[#allocation5 + $0x3e8] sm:$0xff] }
  0xe3   :  { %v318_v40 = vld [vmem:[#allocation2 + $0x3e8] sm:$0xff] }
  0xe4   :  { %v675_v61 = vadd.f32 %v674_v56, %v547_v50  ;;  %v434_v50 = vsub.f32 %v178_v43, %v306_v44  ;;  %v561_v56 = vand.u32 2147483647, %v433_v45  ;;  %v191_v44 = vld [vmem:[#allocation5 + $0x3f0] sm:$0xff] }
  0xe5   :  { %v319_v45 = vld [vmem:[#allocation2 + $0x3f0] sm:$0xff] }
  0xe6   :  { %v676_v2 = vadd.f32 %v675_v61, %v548_v55  ;;  %v435_v55 = vsub.f32 %v179_v48, %v307_v49  ;;  %v562_v61 = vand.u32 2147483647, %v434_v50  ;;  %v192_v49 = vld [vmem:[#allocation5 + $0x3f8] sm:$0xff] }
  0xe7   :  { %v320_v50 = vld [vmem:[#allocation2 + $0x3f8] sm:$0xff] }
  0xe8   :  { %v677_v7 = vadd.f32 %v676_v2, %v549_v60  ;;  %v436_v60 = vsub.f32 %v180_v53, %v308_v54  ;;  %v563_v2 = vand.u32 2147483647, %v435_v55  ;;  %v448_v54 = vsub.f32 %v192_v49, %v320_v50 }
  0xea   :  { %v678_v12 = vadd.f32 %v677_v7, %v550_v1  ;;  %v437_v1 = vsub.f32 %v181_v58, %v309_v59  ;;  %v564_v7 = vand.u32 2147483647, %v436_v60  ;;  %v576_v59 = vand.u32 2147483647, %v448_v54 }
  0xec   :  { %v679_v17 = vadd.f32 %v678_v12, %v551_v6  ;;  %v438_v6 = vsub.f32 %v182_v63, %v310_v0  ;;  %v565_v12 = vand.u32 2147483647, %v437_v1 }
  0xee   :  { %v680_v22 = vadd.f32 %v679_v17, %v552_v11  ;;  %v439_v11 = vsub.f32 %v183_v4, %v311_v5  ;;  %v566_v17 = vand.u32 2147483647, %v438_v6 }
  0xf0   :  { %v681_v27 = vadd.f32 %v680_v22, %v553_v16  ;;  %v440_v16 = vsub.f32 %v184_v9, %v312_v10  ;;  %v567_v22 = vand.u32 2147483647, %v439_v11 }
  0xf2   :  { %v682_v32 = vadd.f32 %v681_v27, %v554_v21  ;;  %v441_v21 = vsub.f32 %v185_v14, %v313_v15  ;;  %v568_v27 = vand.u32 2147483647, %v440_v16 }
  0xf4   :  { %v683_v37 = vadd.f32 %v682_v32, %v555_v26  ;;  %v442_v26 = vsub.f32 %v186_v19, %v314_v20  ;;  %v569_v32 = vand.u32 2147483647, %v441_v21 }
  0xf6   :  { %v684_v42 = vadd.f32 %v683_v37, %v556_v31  ;;  %v443_v31 = vsub.f32 %v187_v24, %v315_v25  ;;  %v570_v37 = vand.u32 2147483647, %v442_v26 }
  0xf8   :  { %v685_v47 = vadd.f32 %v684_v42, %v557_v36  ;;  %v444_v36 = vsub.f32 %v188_v29, %v316_v30  ;;  %v571_v42 = vand.u32 2147483647, %v443_v31 }
  0xfa   :  { %v686_v52 = vadd.f32 %v685_v47, %v558_v41  ;;  %v445_v41 = vsub.f32 %v189_v34, %v317_v35  ;;  %v572_v47 = vand.u32 2147483647, %v444_v36 }
  0xfc   :  { %v687_v57 = vadd.f32 %v686_v52, %v559_v46  ;;  %v446_v46 = vsub.f32 %v190_v39, %v318_v40  ;;  %v573_v52 = vand.u32 2147483647, %v445_v41 }
  0xfe   :  { %v688_v62 = vadd.f32 %v687_v57, %v560_v51  ;;  %v447_v51 = vsub.f32 %v191_v44, %v319_v45  ;;  %v574_v55 = vand.u32 2147483647, %v446_v46 }
 0x100   :  { %v689_v3 = vadd.f32 %v688_v62, %v561_v56  ;;  %v575_v57 = vand.u32 2147483647, %v447_v51 }
 0x102   :  { %v690_v8 = vadd.f32 %v689_v3, %v562_v61 }
 0x104   :  { %v691_v13 = vadd.f32 %v690_v8, %v563_v2 }
 0x106   :  { %v692_v18 = vadd.f32 %v691_v13, %v564_v7 }
 0x108   :  { %v693_v23 = vadd.f32 %v692_v18, %v565_v12 }
 0x10a   :  { %v694_v28 = vadd.f32 %v693_v23, %v566_v17 }
 0x10c   :  { %v695_v33 = vadd.f32 %v694_v28, %v567_v22 }
 0x10e   :  { %v696_v38 = vadd.f32 %v695_v33, %v568_v27 }
 0x110   :  { %v697_v43 = vadd.f32 %v696_v38, %v569_v32 }
 0x112   :  { %v698_v48 = vadd.f32 %v697_v43, %v570_v37 }
 0x114   :  { %v699_v53 = vadd.f32 %v698_v48, %v571_v42 }
 0x116   :  { %v700_v56 = vadd.f32 %v699_v53, %v572_v47 }
 0x118   :  { %v701_v58 = vadd.f32 %v700_v56, %v573_v52 }
 0x11a   :  { %v702_v60 = vadd.f32 %v701_v58, %v574_v55 }
 0x11c   :  { %v703_v61 = vadd.f32 %v702_v60, %v575_v57 }
 0x11e   :  { %v704_v62 = vadd.f32 %v703_v61, %v576_v59 }
 0x120   :  { %706 = vst [vmem:[#allocation7] sm:$0xff] %v704_v62 }
 0x121   :  { %784 = shalt.err (!%p781_p0)
}
 0x122   :  { %716 = dma.vmem_to_hbm [thread:$0]  %s714_s1, 128, %s830_s2, [#allocation4]  }
 0x123   :  { %797 = dma.done.wait [#allocation4], 128  }
 0x124   :  { %798 = vsyncadd [#allocation4], 4294967168 }
 0x125   :  { %720 = vsyncpa [#allocation3], 1 }
 0x126   :  { %721 = vsyncpa [#allocation6], 1 }
 0x127   :  { %722 = vsyncpa [#allocation4], 1 }

</bundles_post_ra>
